<compile_context>
chip_gen: v5e
topology: v5e:2x2
jax: 0.10.0
libtpu: 0.0.40
codegen_flags: <defaults>
</compile_context>

<pallas_src>
from functools import partial

import jax
import jax.numpy as jnp
from jax.experimental import pallas as pl
from jax.experimental.pallas import tpu as pltpu


# ---------------------------------------------------------------------------
# small helpers
# ---------------------------------------------------------------------------
def _round8(v):
    return max(8, ((int(v) + 7) // 8) * 8)


def _pick_block_rows(n_rows, requested):
    """Row-tile size: multiple of 8 sublanes, as large as requested, but split
    into >=2 tiles when the row count allows so both v7x TCs get work."""
    br = min(_round8(requested), _round8(n_rows))
    if n_rows > 8 and pl.cdiv(n_rows, br) < 2:
        br = _round8(pl.cdiv(n_rows, 2))
    return br


def _compiler_params(vmem_need_bytes, num_grid_dims=1):
    """Scoped-VMEM policy: request roughly what the double-buffered pipeline
    needs (the estimate already counts double buffering -- no extra 2x) and
    leave 16 MiB headroom below physical per-core VMEM."""
    try:
        cap = int(getattr(pltpu.get_tpu_info(), "vmem_capacity_bytes", 64 << 20))
    except Exception:
        cap = 64 << 20
    limit = max(32 << 20, int(vmem_need_bytes) + (4 << 20))
    limit = max(16 << 20, min(limit, cap - (16 << 20)))
    return pltpu.CompilerParams(
        dimension_semantics=("parallel",) * num_grid_dims,
        vmem_limit_bytes=int(limit))


def _vec_spec(d):
    return pl.BlockSpec((1, d), lambda i: (0, 0))


# ---------------------------------------------------------------------------
# Parameter / rotation preparation (hoisted out of the per-layer forward).
# ---------------------------------------------------------------------------
def prepare_block_params(raw, *, mixer_dtype=jnp.bfloat16):
    """Cast/reshape the layer parameters once (reused every forward call)."""
    D = raw["norm_w"].shape[-1]
    return {
        "norm_w": raw["norm_w"].reshape(1, D).astype(jnp.float32),
        "norm_b": raw["norm_b"].reshape(1, D).astype(jnp.float32),
        "mixer_w": raw["mixer_w"].astype(mixer_dtype),   # bf16-resident weight
        "mixer_b": raw["mixer_b"].reshape(1, D).astype(jnp.float32),
    }


def compute_rotate_indices(H, W):
    idx = jnp.arange(H * W, dtype=jnp.int32)
    i, j = idx // W, idx % W
    return j * H + i


def prepare_rotation(ids_keep, token_size):
    """Precompute the rotation permutation ONCE per sequence (it is identical
    for every odd layer): argsort / index math hoisted out of the forward."""
    H, W = token_size
    ri = compute_rotate_indices(H, W)
    ids_keep_r = ri[ids_keep]
    rotated_ids = jnp.argsort(ids_keep_r, axis=1).astype(jnp.int32)   # (B, L)
    B, L = rotated_ids.shape
    return {
        "ids_row": rotated_ids.reshape(B, 1, L),   # lane layout   (for P^T)
        "ids_col": rotated_ids.reshape(B, L, 1),   # sublane layout (for P)
        # The real Mamba mixer would also consume the rotated ids_keep:
        "ids_keep_rotated": jnp.take_along_axis(ids_keep_r, rotated_ids, axis=1),
    }


# ---------------------------------------------------------------------------
# Kernel 1 (non-rotated layers): residual-add + LayerNorm + mixer, one HBM pass.
# ---------------------------------------------------------------------------
def _fused_block_kernel(*refs, eps, has_residual):
    if has_residual:
        hs_ref, res_ref, gamma_ref, beta_ref, w_ref, b_ref, out_ref, res_out_ref = refs
    else:
        hs_ref, gamma_ref, beta_ref, w_ref, b_ref, out_ref, res_out_ref = refs

    hs = hs_ref[...].astype(jnp.float32)
    new_res = res_ref[...].astype(jnp.float32) + hs if has_residual else hs

    # Per-row LayerNorm in f32 (rows are independent, so masked tail rows with
    # undefined contents never affect valid rows).
    mean = jnp.mean(new_res, axis=-1, keepdims=True)
    centered = new_res - mean
    var = jnp.mean(centered * centered, axis=-1, keepdims=True)
    normed = centered * jax.lax.rsqrt(var + eps) * gamma_ref[...] + beta_ref[...]

    # MXU matmul: bf16 operands, f32 accumulation.
    y = jnp.dot(normed.astype(w_ref.dtype), w_ref[...],
                preferred_element_type=jnp.float32)
    out_ref[...] = (y + b_ref[...]).astype(out_ref.dtype)
    res_out_ref[...] = new_res                      # residual_in_fp32


def fused_add_ln_mixer(hidden_states, residual, params, *, eps=1e-5,
                       block_rows=512):
    B, L, D = hidden_states.shape
    N = B * L
    has_residual = residual is not None
    br = _pick_block_rows(N, block_rows)
    n_tiles = pl.cdiv(N, br)            # ragged tail handled by masked block

    hs2 = hidden_states.reshape(N, D)
    inputs = [hs2]
    in_specs = [pl.BlockSpec((br, D), lambda i: (i, 0))]
    vmem = 2 * br * D * hs2.dtype.itemsize
    if has_residual:
        res2 = residual.reshape(N, D)
        inputs.append(res2)
        in_specs.append(pl.BlockSpec((br, D), lambda i: (i, 0)))
        vmem += 2 * br * D * res2.dtype.itemsize

    inputs += [params["norm_w"], params["norm_b"],
               params["mixer_w"], params["mixer_b"]]
    in_specs += [_vec_spec(D), _vec_spec(D),
                 pl.BlockSpec((D, D), lambda i: (0, 0)),   # grid-invariant weight
                 _vec_spec(D)]
    vmem += (2 * D * D * params["mixer_w"].dtype.itemsize
             + 2 * br * D * hidden_states.dtype.itemsize   # mixer out
             + 2 * br * D * 4                              # residual out (f32)
             + 8 * D * 4)

    out, res_out = pl.pallas_call(
        partial(_fused_block_kernel, eps=eps, has_residual=has_residual),
        out_shape=(jax.ShapeDtypeStruct((N, D), hidden_states.dtype),
                   jax.ShapeDtypeStruct((N, D), jnp.float32)),
        grid_spec=pltpu.PrefetchScalarGridSpec(
            num_scalar_prefetch=0,
            grid=(n_tiles,),
            in_specs=in_specs,
            out_specs=[pl.BlockSpec((br, D), lambda i: (i, 0)),
                       pl.BlockSpec((br, D), lambda i: (i, 0))]),
        compiler_params=_compiler_params(vmem),
    )(*inputs)
    return out.reshape(B, L, D), res_out.reshape(B, L, D)


# ---------------------------------------------------------------------------
# Kernel 2 (rotated layers): add + LN + rotation gather + mixer + inverse
# scatter, fused per batch sample (no intermediate HBM round trips).
# ---------------------------------------------------------------------------
def _rotated_block_kernel(*refs, eps, has_residual):
    if has_residual:
        (hs_ref, res_ref, ids_row_ref, ids_col_ref, gamma_ref, beta_ref,
         w_ref, b_ref, out_ref, res_out_ref) = refs
    else:
        (hs_ref, ids_row_ref, ids_col_ref, gamma_ref, beta_ref,
         w_ref, b_ref, out_ref, res_out_ref) = refs

    hs = hs_ref[0].astype(jnp.float32)                         # (L, D)
    new_res = res_ref[0].astype(jnp.float32) + hs if has_residual else hs

    mean = jnp.mean(new_res, axis=-1, keepdims=True)
    centered = new_res - mean
    var = jnp.mean(centered * centered, axis=-1, keepdims=True)
    normed = centered * jax.lax.rsqrt(var + eps) * gamma_ref[...] + beta_ref[...]

    L = hs.shape[0]
    ids_col = ids_col_ref[0]                                   # (L, 1) int32
    ids_row = ids_row_ref[0]                                   # (1, L) int32
    col_iota = jax.lax.broadcasted_iota(jnp.int32, (L, L), 1)
    row_iota = jax.lax.broadcasted_iota(jnp.int32, (L, L), 0)
    # One-hot permutation matrices built in-kernel from the int32 ids.
    # (For very large L, replace with jnp.take / DMA row gather.)
    perm = (ids_col == col_iota).astype(w_ref.dtype)           # P[i,j]=ids[i]==j
    perm_t = (row_iota == ids_row).astype(jnp.float32)         # P^T

    # Gather normed tokens into rotated order (exact: one-hot selects bf16 rows).
    x_rot = jnp.dot(perm, normed.astype(w_ref.dtype),
                    preferred_element_type=jnp.float32).astype(w_ref.dtype)
    # TODO(synk): the real mixer_cls is a Mamba selective-SSM consuming x_rot
    # (rotated token order) plus the rotated ids_keep; a deterministic row-wise
    # linear mixer (bf16 MXU matmul + bias) stands in here.
    y = jnp.dot(x_rot, w_ref[...], preferred_element_type=jnp.float32) + b_ref[...]
    # Inverse permutation back to the original token order (f32 matmul).
    out = jnp.dot(perm_t, y, preferred_element_type=jnp.float32)

    out_ref[0] = out.astype(out_ref.dtype)
    res_out_ref[0] = new_res                                   # residual_in_fp32


def fused_rotated_block(hidden_states, residual, params, rotation, *, eps=1e-5):
    B, L, D = hidden_states.shape
    has_residual = residual is not None
    slab = lambda b: (b, 0, 0)

    inputs = [hidden_states]
    in_specs = [pl.BlockSpec((1, L, D), slab)]
    vmem = 2 * L * D * hidden_states.dtype.itemsize
    if has_residual:
        inputs.append(residual)
        in_specs.append(pl.BlockSpec((1, L, D), slab))
        vmem += 2 * L * D * residual.dtype.itemsize

    inputs += [rotation["ids_row"], rotation["ids_col"],
               params["norm_w"], params["norm_b"],
               params["mixer_w"], params["mixer_b"]]
    in_specs += [pl.BlockSpec((1, 1, L), slab),
                 pl.BlockSpec((1, L, 1), slab),
                 _vec_spec(D), _vec_spec(D),
                 pl.BlockSpec((D, D), lambda b: (0, 0)),
                 _vec_spec(D)]
    vmem += (2 * D * D * params["mixer_w"].dtype.itemsize
             + 2 * L * D * hidden_states.dtype.itemsize        # hs out
             + 2 * L * D * 4                                   # residual out
             + 4 * L * L * 4 + 8 * L * 4 + 8 * D * 4)          # perms / ids / vecs

    out, res_out = pl.pallas_call(
        partial(_rotated_block_kernel, eps=eps, has_residual=has_residual),
        out_shape=(jax.ShapeDtypeStruct((B, L, D), hidden_states.dtype),
                   jax.ShapeDtypeStruct((B, L, D), jnp.float32)),
        grid_spec=pltpu.PrefetchScalarGridSpec(
            num_scalar_prefetch=0,
            grid=(B,),
            in_specs=in_specs,
            out_specs=[pl.BlockSpec((1, L, D), slab),
                       pl.BlockSpec((1, L, D), slab)]),
        compiler_params=_compiler_params(vmem),
    )(*inputs)
    return out, res_out


# ---------------------------------------------------------------------------
# Block_masked forward (JAX glue around the Pallas kernels).
# ---------------------------------------------------------------------------
def block_masked_forward(params, hidden_states, residual, rotation, *,
                         layer_idx, rotate_every_block=True, eps=1e-5,
                         block_rows=512):
    """Returns (hidden_states, residual) exactly as Block_masked.forward."""
    do_rotate = rotate_every_block and (layer_idx % 2 != 0)
    if not do_rotate:
        return fused_add_ln_mixer(hidden_states, residual, params,
                                  eps=eps, block_rows=block_rows)
    return fused_rotated_block(hidden_states, residual, params, rotation, eps=eps)


# ---------------------------------------------------------------------------
# Pure-JAX reference (same bf16 mixer cast) for correctness checking.
# ---------------------------------------------------------------------------
def reference_forward(raw_params, hs, res, ids_keep, *, layer_idx, token_size,
                      rotate_every_block=True, eps=1e-5,
                      mixer_dtype=jnp.bfloat16):
    hs32 = hs.astype(jnp.float32)
    new_res = hs32 if res is None else res.astype(jnp.float32) + hs32
    mu = new_res.mean(-1, keepdims=True)
    var = ((new_res - mu) ** 2).mean(-1, keepdims=True)
    normed = ((new_res - mu) * jax.lax.rsqrt(var + eps)
              * raw_params["norm_w"] + raw_params["norm_b"]).astype(hs.dtype)

    do_rotate = rotate_every_block and (layer_idx % 2 != 0)
    B = hs.shape[0]
    if do_rotate:
        H, W = token_size
        ri = compute_rotate_indices(H, W)
        bi = jnp.arange(B)[:, None]
        rid = jnp.argsort(ri[ids_keep], axis=1)
        inv = jnp.argsort(rid, axis=1)
        normed = normed[bi, rid]

    Bq, Lq, Dq = normed.shape
    mixed = (jnp.dot(normed.reshape(-1, Dq).astype(mixer_dtype),
                     raw_params["mixer_w"].astype(mixer_dtype),
                     preferred_element_type=jnp.float32)
             + raw_params["mixer_b"]).astype(hs.dtype).reshape(Bq, Lq, Dq)
    if do_rotate:
        mixed = mixed[bi, inv]
    return mixed, new_res


# ---------------------------------------------------------------------------
# Demo / smoke test.
# ---------------------------------------------------------------------------
if __name__ == "__main__":
    key = jax.random.PRNGKey(0)
    k_hs, k_res, k_nw, k_nb, k_w, k_b, k_ids = jax.random.split(key, 7)

    B, D = 2, 32            # D=32 keeps the smoke test tiny; production D
    H, W = 4, 4             # should be a multiple of 128 (lane-dense stores).
    L_keep = 8              # kept (unmasked) tokens per sample

    hidden_states = jax.random.normal(k_hs, (B, L_keep, D), dtype=jnp.float32)
    residual = jax.random.normal(k_res, (B, L_keep, D), dtype=jnp.float32)

    perm0 = jax.random.permutation(k_ids, H * W)
    perm1 = jax.random.permutation(jax.random.fold_in(k_ids, 1), H * W)
    ids_keep = jnp.stack([perm0[:L_keep], perm1[:L_keep]], axis=0).astype(jnp.int32)

    raw_params = {
        "norm_w": 1.0 + 0.1 * jax.random.normal(k_nw, (D,), dtype=jnp.float32),
        "norm_b": 0.1 * jax.random.normal(k_nb, (D,), dtype=jnp.float32),
        "mixer_w": jax.random.normal(k_w, (D, D), dtype=jnp.float32) / jnp.sqrt(D),
        "mixer_b": 0.1 * jax.random.normal(k_b, (D,), dtype=jnp.float32),
    }
    params = prepare_block_params(raw_params)     # hoisted casts/reshapes

    def check(name, layer_idx, hs_in, res_in, ids):
        rot = prepare_rotation(ids, (H, W))       # once per sequence in practice
        hs_out, res_out = block_masked_forward(
            params, hs_in, res_in, rot, layer_idx=layer_idx)
        jax.block_until_ready((hs_out, res_out))

        assert hs_out.shape == hs_in.shape, name
        assert res_out.shape == hs_in.shape, name
        assert res_out.dtype == jnp.float32, name

        ref_hs, ref_res = reference_forward(
            raw_params, hs_in, res_in, ids, layer_idx=layer_idx, token_size=(H, W))
        assert jnp.allclose(res_out, ref_res, atol=1e-5), name
        assert jnp.allclose(hs_out, ref_hs, atol=2e-3, rtol=2e-3), name

    check("layer0_first_block_no_residual", 0, hidden_states, None, ids_keep)
    check("layer0_with_residual", 0, hidden_states, residual, ids_keep)
    check("layer1_rotated", 1, hidden_states, residual, ids_keep)

    # Ragged row count (B*L not a multiple of the row tile): exercises the
    # masked-tail path that replaced the pad / slice HBM round trips.
    L_odd = 9
    hs_odd = jax.random.normal(jax.random.fold_in(k_hs, 2), (B, L_odd, D),
                               dtype=jnp.float32)
    res_odd = jax.random.normal(jax.random.fold_in(k_res, 2), (B, L_odd, D),
                                dtype=jnp.float32)
    ids_odd = jnp.stack([perm0[:L_odd], perm1[:L_odd]], axis=0).astype(jnp.int32)
    check("layer0_ragged_tail", 0, hs_odd, res_odd, ids_odd)

    print("KERNEL_OK")
</pallas_src>

<mosaic_0001>
module attributes {stable_mosaic.version = 11 : i64} {
  func.func @_fused_block_kernel(%arg0: i32, %arg1: memref<8x32xf32, #tpu.memory_space<vmem>>, %arg2: memref<1x32xf32, #tpu.memory_space<vmem>>, %arg3: memref<1x32xf32, #tpu.memory_space<vmem>>, %arg4: memref<32x32xbf16, #tpu.memory_space<vmem>>, %arg5: memref<1x32xf32, #tpu.memory_space<vmem>>, %arg6: memref<8x32xf32, #tpu.memory_space<vmem>>, %arg7: memref<8x32xf32, #tpu.memory_space<vmem>>) attributes {dimension_semantics = [#tpu.dimension_semantics<parallel>], iteration_bounds = array<i64: 2>, scalar_prefetch = 0 : i64, scratch_operands = 0 : i64, tpu.core_type = #tpu.core_type<tc>, window_params = [{transform_indices = @transform_0, window_bounds = array<i64: 8, 32>}, {pipeline_mode = #tpu.pipeline_mode<synchronous>, transform_indices = @transform_1, window_bounds = array<i64: 1, 32>}, {pipeline_mode = #tpu.pipeline_mode<synchronous>, transform_indices = @transform_2, window_bounds = array<i64: 1, 32>}, {pipeline_mode = #tpu.pipeline_mode<synchronous>, transform_indices = @transform_3, window_bounds = array<i64: 32, 32>}, {pipeline_mode = #tpu.pipeline_mode<synchronous>, transform_indices = @transform_4, window_bounds = array<i64: 1, 32>}, {transform_indices = @transform_5, window_bounds = array<i64: 8, 32>}, {transform_indices = @transform_6, window_bounds = array<i64: 8, 32>}]} {
    %c0 = arith.constant 0 : index
    %c0_0 = arith.constant 0 : index
    %0 = vector.load %arg1[%c0, %c0_0] : memref<8x32xf32, #tpu.memory_space<vmem>>, vector<8x32xf32>
    %cst = arith.constant dense<0.000000e+00> : vector<8xf32>
    %1 = vector.multi_reduction <add>, %0, %cst [1] : vector<8x32xf32> to vector<8xf32>
    %2 = vector.shape_cast %1 : vector<8xf32> to vector<8x1xf32>
    %cst_1 = arith.constant 3.200000e+01 : f32
    %3 = vector.broadcast %cst_1 : f32 to vector<8x1xf32>
    %4 = arith.divf %2, %3 : vector<8x1xf32>
    %5 = vector.broadcast %4 : vector<8x1xf32> to vector<8x32xf32>
    %6 = arith.subf %0, %5 : vector<8x32xf32>
    %7 = arith.mulf %6, %6 : vector<8x32xf32>
    %cst_2 = arith.constant dense<0.000000e+00> : vector<8xf32>
    %8 = vector.multi_reduction <add>, %7, %cst_2 [1] : vector<8x32xf32> to vector<8xf32>
    %9 = vector.shape_cast %8 : vector<8xf32> to vector<8x1xf32>
    %cst_3 = arith.constant 3.200000e+01 : f32
    %10 = vector.broadcast %cst_3 : f32 to vector<8x1xf32>
    %11 = arith.divf %9, %10 : vector<8x1xf32>
    %cst_4 = arith.constant 9.99999974E-6 : f32
    %12 = vector.broadcast %cst_4 : f32 to vector<8x1xf32>
    %13 = arith.addf %11, %12 : vector<8x1xf32>
    %14 = math.rsqrt %13 : vector<8x1xf32>
    %15 = vector.broadcast %14 : vector<8x1xf32> to vector<8x32xf32>
    %16 = arith.mulf %6, %15 : vector<8x32xf32>
    %c0_5 = arith.constant 0 : index
    %c0_6 = arith.constant 0 : index
    %17 = vector.load %arg2[%c0_5, %c0_6] : memref<1x32xf32, #tpu.memory_space<vmem>>, vector<1x32xf32>
    %18 = vector.broadcast %17 : vector<1x32xf32> to vector<8x32xf32>
    %19 = arith.mulf %16, %18 : vector<8x32xf32>
    %c0_7 = arith.constant 0 : index
    %c0_8 = arith.constant 0 : index
    %20 = vector.load %arg3[%c0_7, %c0_8] : memref<1x32xf32, #tpu.memory_space<vmem>>, vector<1x32xf32>
    %21 = vector.broadcast %20 : vector<1x32xf32> to vector<8x32xf32>
    %22 = arith.addf %19, %21 : vector<8x32xf32>
    %23 = arith.truncf %22 : vector<8x32xf32> to vector<8x32xbf16>
    %c0_9 = arith.constant 0 : index
    %c0_10 = arith.constant 0 : index
    %24 = vector.load %arg4[%c0_9, %c0_10] : memref<32x32xbf16, #tpu.memory_space<vmem>>, vector<32x32xbf16>
    %cst_11 = arith.constant dense<0.000000e+00> : vector<8x32xf32>
    %25 = tpu.matmul %23, %24, %cst_11 {dimension_numbers = #tpu.dot_dimension_numbers<[1], [0], [0], [1], [0, 0, 1, 1], [], []>} : vector<8x32xbf16>, vector<32x32xbf16>, vector<8x32xf32> -> vector<8x32xf32>
    %c0_12 = arith.constant 0 : index
    %c0_13 = arith.constant 0 : index
    %26 = vector.load %arg5[%c0_12, %c0_13] : memref<1x32xf32, #tpu.memory_space<vmem>>, vector<1x32xf32>
    %27 = vector.broadcast %26 : vector<1x32xf32> to vector<8x32xf32>
    %28 = arith.addf %25, %27 : vector<8x32xf32>
    %c0_14 = arith.constant 0 : index
    %c0_15 = arith.constant 0 : index
    %29 = vector.load %arg6[%c0_14, %c0_15] : memref<8x32xf32, #tpu.memory_space<vmem>>, vector<8x32xf32>
    tpu.vector_store %arg6[%c0_14, %c0_15], %28 {strides = array<i32>} : memref<8x32xf32, #tpu.memory_space<vmem>>, vector<8x32xf32>,
    %c0_16 = arith.constant 0 : index
    %c0_17 = arith.constant 0 : index
    %30 = vector.load %arg7[%c0_16, %c0_17] : memref<8x32xf32, #tpu.memory_space<vmem>>, vector<8x32xf32>
    tpu.vector_store %arg7[%c0_16, %c0_17], %0 {strides = array<i32>} : memref<8x32xf32, #tpu.memory_space<vmem>>, vector<8x32xf32>,
    return
  }
  func.func @transform_0(%arg0: i32) -> (i32, i32) {
    %c0_i32 = arith.constant 0 : i32
    %c0_i32_0 = arith.constant 0 : i32
    return %arg0, %c0_i32 : i32, i32
  }
  func.func @transform_1(%arg0: i32) -> (i32, i32) {
    %c0_i32 = arith.constant 0 : i32
    %c0_i32_0 = arith.constant 0 : i32
    %c0_i32_1 = arith.constant 0 : i32
    return %c0_i32, %c0_i32_0 : i32, i32
  }
  func.func @transform_2(%arg0: i32) -> (i32, i32) {
    %c0_i32 = arith.constant 0 : i32
    %c0_i32_0 = arith.constant 0 : i32
    %c0_i32_1 = arith.constant 0 : i32
    return %c0_i32, %c0_i32_0 : i32, i32
  }
  func.func @transform_3(%arg0: i32) -> (i32, i32) {
    %c0_i32 = arith.constant 0 : i32
    %c0_i32_0 = arith.constant 0 : i32
    %c0_i32_1 = arith.constant 0 : i32
    return %c0_i32, %c0_i32_0 : i32, i32
  }
  func.func @transform_4(%arg0: i32) -> (i32, i32) {
    %c0_i32 = arith.constant 0 : i32
    %c0_i32_0 = arith.constant 0 : i32
    %c0_i32_1 = arith.constant 0 : i32
    return %c0_i32, %c0_i32_0 : i32, i32
  }
  func.func @transform_5(%arg0: i32) -> (i32, i32) {
    %c0_i32 = arith.constant 0 : i32
    %c0_i32_0 = arith.constant 0 : i32
    return %arg0, %c0_i32 : i32, i32
  }
  func.func @transform_6(%arg0: i32) -> (i32, i32) {
    %c0_i32 = arith.constant 0 : i32
    %c0_i32_0 = arith.constant 0 : i32
    return %arg0, %c0_i32 : i32, i32
  }
}

</mosaic_0001>

<bundles_post_ra>
// kernel: tpu_custom_call.1
= control target key start
LH: loop header
LB: loop body
LE: loop exit
PB: predicated region body
PF: predicated region fallthrough
CT: control target
= control target key end

     0   :  { %s1066_s0 = inlined_call_operand.hbm [shape: f32[16,32], index: 0, kind: input, shape index: {}]   ;;  %s1067_s1 = inlined_call_operand.hbm [shape: f32[1,32], index: 1, kind: input, shape index: {}]   ;;  %s1068_s2 = inlined_call_operand.vmem [shape: f32[1,32], index: 2, kind: input, shape index: {}]   ;;  %s1069_s3 = inlined_call_operand.hbm [shape: bf16[32,32], index: 3, kind: input, shape index: {}]   ;;  %s1070_s4 = inlined_call_operand.vmem [shape: f32[1,32], index: 4, kind: input, shape index: {}]   ;;  %s1071_s5 = inlined_call_operand.hbm [shape: f32[16,32], index: 5, kind: output, shape index: {0}]   ;;  %s1072_s6 = inlined_call_operand.hbm [shape: f32[16,32], index: 6, kind: output, shape index: {1}]  }
   0x1   :  { %1073 = sst [smem:[#allocation15_spill]] %s1066_s0 }
   0x2   :  { %12 = vsyncpa [#allocation3], 0 }
   0x3   :  { %14 = vsyncpa [#allocation3 + $0x1], 0 }
   0x4   :  { %15 = vsyncpa [#allocation6], 0 }
   0x5   :  { %16 = vsyncpa [#allocation4], 0 }
   0x6   :  { %18 = vsyncpa [#allocation4 + $0x1], 0 }
   0x7   :  { %19 = vsyncpa [#allocation10], 0 }
   0x8   :  { %21 = vsyncpa [#allocation10 + $0x1], 0  ;;  %s895_s21 = smov 0   ;;  %s897_s22 = smov 0  }
   0x9   :  { %s899_s23 = smov 0   ;;  %s901_s24 = smov 0  }
   0xa LB: > { %s916_s25 = sadd.s32 4294967295, %s853_s24   ;;  %s549_s26 = sadd.s32 4294967294, %s853_s24   ;;  %s853_s24 = sphi %s901_s24, %s1084_s24   ;;  %s849_s23 = sphi %s899_s23, %s1083_s23   ;;  %s845_s22 = sphi %s897_s22, %s1082_s22   ;;  %s841_s21 = sphi %s895_s21, %s1081_s21  }
   0xb   : > { %p47_p0 = scmp.ne.s32.totalorder %s845_s22, %s841_s21  ;;  %p48_p1 = scmp.eq.s32.totalorder %s916_s25, 0 }
   0xc   : > { %p155_p2 = scmp.eq.s32.totalorder %s916_s25, 1  ;;  %p161_p3 = scmp.eq.s32.totalorder %s549_s26, 1 }
   0xd   : > { %p925_p4 = por %p48_p1, %p47_p0  ;;  %p550_p5 = scmp.ge.s32.totalorder %s853_s24, 1 }
   0xe   : > { %p930_p6 = por %p161_p3, %p47_p0  ;;  %p194_p7 = scmp.lt.s32.totalorder %s853_s24, 3 }
   0xf   : > { %s206_s7 = sshll.u32 %s1067_s1, 4  ;;  %s855_s9 = smov [#allocation5]   ;;  %s207_s7 = int_to_ptr.hbm [resolvable:$true] %s206_s7 }
  0x10   : > { %p938_p8 = pnand %p550_p5, %p194_p7  ;;  %s208_s10 = sshll.u32 %s855_s9, 4  ;;  %s209_s10 = int_to_ptr.vmem [resolvable:$true] %s208_s10 }
  0x11   : > { %s220_s13 = sshll.u32 %s1069_s3, 4  ;;  %s856_s14 = smov [#allocation7]   ;;  %s221_s13 = int_to_ptr.hbm [resolvable:$true] %s220_s13 }
  0x12   : > { %p593_p10 = pneg %p938_p8  ;;  %s222_s15 = sshll.u32 %s856_s14, 4  ;;  %s223_s15 = int_to_ptr.vmem [resolvable:$true] %s222_s15 }
  0x13   : > { %s857_s16 = smov 64   ;;  %s858_s17 = smov 4  }
  0x14   : > { %p594_p11 = pnand %p593_p10, %p48_p1  ;;  %s951_s18 = sadd.s32 1, %s853_s24  }
  0x15   : > { %s31_s19 = ssub.s32 %s853_s24, %s951_s18  ;;  %s34_s20 = sadd.s32 1, %s849_s23 }
  0x16   : > { %596 = dma.hbm_to_vmem [thread:$0]  (!%p594_p11), %s207_s7, 16, %s209_s10, [#allocation6]  }
  0x17   : > { %599 = dma.hbm_to_vmem [thread:$0]  (!%p594_p11), %s221_s13, 256, %s223_s15, [#allocation6], %s857_s16, %s857_s16, %s858_s17  }
  0x18   : > { %p32_p12 = scmp.eq.s32.totalorder %s31_s19, 0  ;;  %p41_p13 = scmp.ne.s32.totalorder %s849_s23, %s845_s22 }
  0x19   : > { %p42_p0 = scmp.eq.s32.totalorder %s853_s24, 0  ;;  %p613_p7 = scmp.lt.s32.totalorder %s853_s24, 2 }
  0x1a   : > { %s960_s26 = scalar_select %p32_p12, %s849_s23, %s34_s20  }
  0x1b   : > { %p43_p3 = por %p42_p0, %p41_p13  ;;  %p964_p5 = por %p155_p2, %p41_p13 }
  0x1c   : > { %s239_s30 = sand.u32 1, %s849_s23   ;;  %s555_s9 = sshll.u32 %s853_s24, 3 }
  0x1d   : > { %s554_s7 = sshll.u32 %s239_s30, 3  ;;  %s1078_s0 = sld [smem:[#allocation15_spill]] }
  0x1e   : > { %s243_s13 = scalar_lea.vmem [#allocation2], %s554_s7  ;;  %p974_p10 = pnand %p613_p7, %p43_p3 }
  0x1f   : > { %s251_s14 = sshll.u32 %s243_s13, 4  ;;  %s240_s17 = scalar_lea.sflag [#allocation3], %s239_s30  ;;  %s252_s14 = int_to_ptr.vmem [resolvable:$true] %s251_s14 }
  0x20   : > { %p725_p11 = pneg %p974_p10 }
  0x23   : > { %s247_s12 = scalar_lea.hbm %s1078_s0, %s555_s9  ;;  %s728_s10 = scalar_lea.hbm %s1078_s0, 16 }
  0x24   : > { %s249_s15 = sshll.u32 %s247_s12, 4  ;;  %s250_s15 = int_to_ptr.hbm [resolvable:$true] %s249_s15 }
  0x25   : > { %s721_s19 = sshra.s32 %s250_s15, 4  ;;  %s722_s19 = int_to_ptr.hbm [resolvable:$true] %s721_s19 }
  0x26   : > { %s723_s20 = scalar_lea.hbm %s722_s19, 8  ;;  %p729_p0 = scmp.lt.s32.totalorder %s722_s19, %s1078_s0 }
  0x27   : > { %p724_p2 = scmp.ne.s32.totalorder %s722_s19, %s723_s20  ;;  %p730_p3 = scmp.lt.s32.totalorder %s728_s10, %s723_s20 }
  0x29   : > { %p726_p12 = pnand %p725_p11, %p724_p2  ;;  %p731_p7 = por %p730_p3, %p729_p0 }
  0x2b   : > { %p727_p13 = pneg %p726_p12 }
  0x2d   : > { %p732_p9 = pnand %p731_p7, %p727_p13 }
  0x2f   : > { %735 = shalt.err (!%p732_p9)
}
  0x30   : > { %603 = dma.hbm_to_vmem [thread:$0]  (!%p974_p10), %s250_s15, 128, %s252_s14, %s240_s17  }
  0x31   : > { %260 = sbr.rel (%p938_p8) target bundleno = 462 (0x1ce), region = 40  ;;  %s991_s30 = sand.u32 (!%p938_p8), 1, %s845_s22  }
  0x32   : > { %s994_s13 = sshll.u32 (!%p938_p8), %s991_s30, 3  ;;  %s263_s19 = scalar_lea.sflag (!%p938_p8), [#allocation3], %s991_s30 }
  0x33   : > { %s266_s20 = scalar_lea.vmem (!%p938_p8), [#allocation2], %s994_s13 }
  0x36   : > { %824 = dma.done.wait (%p925_p4), %s263_s19, 128  }
  0x37   : > { %826 = vsyncadd (%p925_p4), %s263_s19, 4294967168 }
  0x38   : > { %828 = dma.done.wait (%p48_p1), [#allocation6], 272  }
  0x39   : > { %830 = vsyncadd (%p48_p1), [#allocation6], 4294967024  ;;  %vm313_vm0 = vcmask 261120   ;;  %v312_v0 = vld [vmem:[%s266_s20] sm:$0xff]  ;;  %v859_v2 = vmov 32.0   ;;  %v577_v15 = vld [vmem:[#allocation7] sm:$0xff] }
  0x3a   : > { %v314_v1 = vsel %vm313_vm0, %v312_v0, 0.0  ;;  %657 = vrcp.f32 %v859_v2  ;;  %v578_v14 = vld [vmem:[#allocation7 + $0x8] sm:$0xff]  ;;  %v654_v25 = vld [vmem:[#allocation5] ss:$0 sm:$0xff]  ;;  %s573_s14 = sshll.u32 %s916_s25, 3  ;;  %s310_s15 = scalar_lea.vmem [#allocation9], %s994_s13 }
  0x3b   : > { %315 = vadd.xlane.f32.xlu0 %v314_v1  ;;  %383 = vmatpush.bf16.msra.mxu0 %v578_v14  ;;  %v655_v28 = vld [vmem:[%s1068_s2] ss:$0 sm:$0xff]  ;;  %391 = vst.msk [vmem:[%s310_s15] sm:$0xff] %vm313_vm0, %v312_v0  ;;  %s422_s9 = scalar_lea.hbm %s1072_s6, %s573_s14  ;;  %s424_s7 = sshll.u32 %s310_s15, 4  ;;  %s425_s7 = int_to_ptr.vmem [resolvable:$true] %s424_s7 }
  0x3c   : > { %s426_s10 = sshll.u32 %s422_s9, 4  ;;  %s398_s11 = scalar_lea.sflag [#allocation10], %s991_s30  ;;  %s427_s10 = int_to_ptr.hbm [resolvable:$true] %s426_s10 }
  0x3d   : > { %s765_s12 = sshra.s32 %s427_s10, 4  ;;  %s771_s27 = scalar_lea.hbm %s1072_s6, 16  ;;  %s766_s12 = int_to_ptr.hbm [resolvable:$true] %s765_s12 }
  0x3e   : > { %s767_s19 = scalar_lea.hbm %s766_s12, 8  ;;  %p772_p9 = scmp.lt.s32.totalorder %s766_s12, %s1072_s6 }
  0x3f   : > { %384 = vmatpush.bf16.msra.mxu0 %v577_v15  ;;  %p768_p1 = scmp.ne.s32.totalorder %s766_s12, %s767_s19  ;;  %p773_p10 = scmp.lt.s32.totalorder %s771_s27, %s767_s19 }
  0x40   : > { %v658_v3 = vpop.eup %657 }
  0x41   : > { %v318_v4 = vmul.f32 32.0, %v658_v3  ;;  %vm322_vm1 = vweird.f32 %v658_v3  ;;  %p769_p4 = pnand %p768_p1, %p964_p5  ;;  %p774_p2 = por %p773_p10, %p772_p9 }
  0x43   : > { %v319_v5 = vsub.f32 1.0, %v318_v4  ;;  %p770_p8 = pneg %p769_p4 }
  0x45   : > { %v320_v6 = vmul.f32 %v658_v3, %v319_v5  ;;  %p775_p11 = pnand %p774_p2, %p770_p8 }
  0x47   : > { %v321_v7 = vadd.f32 %v658_v3, %v320_v6 }
  0x49   : > { %v323_v8 = vsel %vm322_vm1, %v658_v3, %v321_v7 }
  0xae   : > { %v316_v9 = vpop.xlane.xlu0 %315 }
  0xaf   : > { %v324_v10 = vmul.f32 %v323_v8, %v316_v9 }
  0xb1   : > { %v325_v11 = vsub.f32 %v312_v0, %v324_v10 }
  0xb3   : > { %v326_v12 = vmul.f32 %v325_v11, %v325_v11 }
  0xb5   : > { %v327_v13 = vsel %vm313_vm0, %v326_v12, 0.0 }
  0xb6   : > { %328 = vadd.xlane.f32.xlu0 %v327_v13 }
 0x129   : > { %v329_v16 = vpop.xlane.xlu0 %328 }
 0x12a   : > { %v330_v17 = vmul.f32 %v329_v16, %v323_v8 }
 0x12c   : > { %v331_v18 = vadd.f32 1e-05, %v330_v17 }
 0x12e   : > { %659 = vrsqrt.f32 %v331_v18  ;;  %vm338_vm3 = vweird.f32 %v331_v18 }
 0x134   : > { %v660_v19 = vpop.eup %659 }
 0x135   : > { %v333_v20 = vmul.f32 %v660_v19, %v331_v18  ;;  %vm339_vm2 = vweird.f32 %v660_v19 }
 0x136   : > { %vm340_vm4 = vmor %vm338_vm3, %vm339_vm2 }
 0x137   : > { %v334_v21 = vmul.f32 %v660_v19, %v333_v20 }
 0x139   : > { %v335_v22 = vmul.f32 0.5, %v334_v21 }
 0x13b   : > { %v336_v23 = vsub.f32 1.5, %v335_v22 }
 0x13d   : > { %v337_v24 = vmul.f32 %v660_v19, %v336_v23 }
 0x13f   : > { %v341_v26 = vsel %vm340_vm4, %v660_v19, %v337_v24 }
 0x140   : > { %v342_v27 = vmul.f32 %v341_v26, %v325_v11 }
 0x142   : > { %v347_v29 = vmul.f32 %v654_v25, %v342_v27 }
 0x144   : > { %v352_v30 = vadd.f32 %v655_v28, %v347_v29 }
 0x146   : > { %v353_v31 = vpack.c.bf16 %v352_v30, %v352_v30 }
 0x148   : > { %570 = vmatmul.msk.bf16.vlgmr.msra.gmra.mxu0 %vm313_vm0, %v353_v31 }
 0x149   : > { %778 = shalt.err (!%p775_p11)
}
 0x14a   : > { %590 = dma.vmem_to_hbm [thread:$0]  (%p964_p5), %s425_s7, 128, %s427_s10, %s398_s11   ;;  %v656_v32 = vld [vmem:[%s1070_s4] ss:$0 sm:$0xff] }
 0x14b   : > { %s408_s17 = scalar_lea.hbm %s1071_s5, %s573_s14  ;;  %s303_s0 = scalar_lea.vmem [#allocation8], %s994_s13 }
 0x14c   : > { %s410_s12 = sshll.u32 %s303_s0, 4  ;;  %s412_s19 = sshll.u32 %s408_s17, 4  ;;  %s411_s12 = int_to_ptr.vmem [resolvable:$true] %s410_s12  ;;  %s413_s19 = int_to_ptr.hbm [resolvable:$true] %s412_s19 }
 0x14d   : > { %s393_s20 = scalar_lea.sflag [#allocation4], %s991_s30  ;;  %s793_s7 = sshra.s32 %s413_s19, 4  ;;  %s794_s7 = int_to_ptr.hbm [resolvable:$true] %s793_s7 }
 0x14e   : > { %s795_s10 = scalar_lea.hbm %s794_s7, 8  ;;  %s799_s13 = scalar_lea.hbm %s1071_s5, 16 }
 0x14f   : > { %p796_p12 = scmp.ne.s32.totalorder %s794_s7, %s795_s10  ;;  %p800_p3 = scmp.lt.s32.totalorder %s794_s7, %s1071_s5 }
 0x150   : > { %p801_p7 = scmp.lt.s32.totalorder %s799_s13, %s795_s10 }
 0x151   : > { %p797_p13 = pnand %p796_p12, %p964_p5 }
 0x152   : > { %p802_p1 = por %p801_p7, %p800_p3 }
 0x153   : > { %p798_p0 = pneg %p797_p13 }
 0x155   : > { %p803_p4 = pnand %p802_p1, %p798_p0 }
 0x1c5   : > { %v386_v33 = vpop.f32.mrf.mxu0 }
 0x1c6   : > { %v387_v34 = vadd.f32 %v656_v32, %v386_v33 }
 0x1c8   : > { %390 = vst.msk [vmem:[%s303_s0] sm:$0xff] %vm313_vm0, %v387_v34 }
 0x1c9   : > { %806 = shalt.err (!%p803_p4)
}
 0x1ca   : > { %589 = dma.vmem_to_hbm [thread:$0]  (%p964_p5), %s411_s12, 128, %s413_s19, %s393_s20  }
 0x1cd   : > { %v388_v35 = vpop.f32.mrf.mxu0 }
 0x1ce PF: > { %s438_s30 = sand.u32 1, %s841_s21   ;;  %p1080_p8 = scmp.ge.s32.totalorder %s853_s24, 2 }
 0x1cf   : > { %s439_s15 = scalar_lea.sflag [#allocation4], %s438_s30 }
 0x1d0   : > { %p605_p9 = pnand %p1080_p8, %p930_p6 }
 0x1d2   : > { %p606_p10 = pneg %p605_p9 }
 0x1d4   : > { %832 = dma.done.wait (%p606_p10), %s439_s15, 128  }
 0x1d5   : > { %834 = vsyncadd (%p606_p10), %s439_s15, 4294967168  ;;  %s449_s16 = scalar_lea.sflag [#allocation10], %s438_s30 }
 0x1d6   : > { %836 = dma.done.wait (%p606_p10), %s449_s16, 128  }
 0x1d7   : > { %838 = vsyncadd (%p606_p10), %s449_s16, 4294967168  ;;  %p24_p5 = scmp.ge.s32.totalorder %s951_s18, 4   ;;  %s1081_s21 = smov %s845_s22 }
 0x1d8   : > { %s1082_s22 = smov %s849_s23  ;;  %s1083_s23 = smov %s960_s26 }
 0x1d9   : > { %s1084_s24 = smov %s951_s18  ;;  %26 = sbr.rel (!%p24_p5) target bundleno = 10 (0xa), region = 110 }
 0x1de   :  { %455 = vsyncpa [#allocation3], 1 }
 0x1df   :  { %457 = vsyncpa [#allocation3 + $0x1], 1 }
 0x1e0   :  { %458 = vsyncpa [#allocation6], 1 }
 0x1e1   :  { %459 = vsyncpa [#allocation4], 1 }
 0x1e2   :  { %461 = vsyncpa [#allocation4 + $0x1], 1 }
 0x1e3   :  { %462 = vsyncpa [#allocation10], 1 }
 0x1e4   :  { %464 = vsyncpa [#allocation10 + $0x1], 1 }

</bundles_post_ra>
